<compile_context>
chip_gen: v5e
topology: v5e:2x2
jax: 0.10.0
libtpu: 0.0.40
codegen_flags: <defaults>
</compile_context>

<pallas_src>
import functools
import math

import jax
import jax.numpy as jnp
from jax.experimental import pallas as pl
from jax.experimental.pallas import tpu as pltpu


_LANE = 128          # last-dim (lane) alignment
_SUBLANE = 16        # batch (sublane) alignment; 16 covers f32 (8) and bf16 (16)
_BATCH_TILE = 128    # batch tile once the padded batch exceeds this


def _round_up(x, m):
    return ((x + m - 1) // m) * m


def _pad2d(a, rows, cols):
    return jnp.pad(a, ((0, rows - a.shape[0]), (0, cols - a.shape[1])))


def _fused_mlp_kernel(*refs, relu_flags):
    """refs = (x_ref, w0_ref, b0_ref, w1_ref, b1_ref, ..., o_ref).

    Static Python loop over layers (unrolled at trace time).  Matmuls run on
    the MXU in the parameter dtype with f32 accumulation; bias-add and ReLU
    are done in f32; the activation stays in vregs/VMEM between layers.
    """
    x_ref = refs[0]
    o_ref = refs[-1]
    wb_refs = refs[1:-1]

    h = x_ref[...].astype(jnp.float32)  # (TB, Din_p)
    for li, relu in enumerate(relu_flags):
        w = wb_refs[2 * li][...]                       # (Din_p, Dout_p), f32 or bf16
        b = wb_refs[2 * li + 1][...]                   # (1, Dout_p), f32
        h = jnp.dot(h.astype(w.dtype), w, preferred_element_type=jnp.float32)
        h = h + b.astype(jnp.float32)
        if relu:
            h = jnp.maximum(h, 0.0)
    o_ref[...] = h.astype(o_ref.dtype)


def _vmem_limit_bytes(flat_params, x_itemsize, tb, din_p, dout_p, widths):
    """Size the scoped VMEM limit from the actual resident footprint."""
    param_bytes = sum(int(p.size) * p.dtype.itemsize for p in flat_params)
    io_bytes = 2 * tb * (din_p + dout_p) * x_itemsize   # double-buffered x/out tiles
    inter_bytes = 2 * tb * max(widths) * 4               # f32 intermediate activations
    est = 2 * param_bytes + io_bytes + inter_bytes + (4 << 20)
    # Defaults are 16 MiB (v5e) / 32 MiB (v6e,v7x); cap at 64 MiB (v7x physical).
    return int(min(max(est, 32 << 20), 64 << 20))


def fused_mlp(x, pweights, pbiases, *, relu_flags, out_dim):
    """One pallas_call for the whole (padded) MLP forward; slices the result."""
    assert len(pweights) == len(pbiases) == len(relu_flags)
    B, Din = x.shape
    din_p = pweights[0].shape[0]
    dout_p = pweights[-1].shape[1]

    # Pad batch to sublane alignment; tile it once it exceeds _BATCH_TILE.
    bp = _round_up(max(B, 1), _SUBLANE)
    if bp > _BATCH_TILE:
        bp = _round_up(B, _BATCH_TILE)
        tb = _BATCH_TILE
    else:
        tb = bp
    grid = (bp // tb,)

    xp = jnp.pad(x, ((0, bp - B), (0, din_p - Din)))

    flat_params = []
    for w, b in zip(pweights, pbiases):
        flat_params.append(w)
        flat_params.append(b)

    x_spec = pl.BlockSpec((tb, din_p), lambda i: (i, 0))
    param_specs = []
    for w, b in zip(pweights, pbiases):
        param_specs.append(pl.BlockSpec(w.shape, lambda i: (0, 0)))  # resident
        param_specs.append(pl.BlockSpec(b.shape, lambda i: (0, 0)))  # resident
    out_spec = pl.BlockSpec((tb, dout_p), lambda i: (i, 0))

    widths = [w.shape[1] for w in pweights]
    vmem_limit = _vmem_limit_bytes(
        flat_params, x.dtype.itemsize, tb, din_p, dout_p, widths
    )

    kernel = functools.partial(_fused_mlp_kernel, relu_flags=tuple(relu_flags))
    out_p = pl.pallas_call(
        kernel,
        out_shape=jax.ShapeDtypeStruct((bp, dout_p), x.dtype),
        grid=grid,
        in_specs=[x_spec] + param_specs,
        out_specs=out_spec,
        compiler_params=pltpu.CompilerParams(
            dimension_semantics=("parallel",),
            vmem_limit_bytes=vmem_limit,
        ),
    )(xp, *flat_params)

    return out_p[:B, :out_dim]


class MLP:
    """JAX/Pallas mirror of the PyTorch MLP module (forward semantics only)."""

    def __init__(self, inp, hid, out, num_layer, key, param_dtype=jnp.float32):
        weights, biases, relu_flags = [], [], []
        unit = inp
        for _ in range(num_layer):
            bound = 1.0 / math.sqrt(hid)  # spec: bound = 1/sqrt(hid)
            key, wk = jax.random.split(key)
            # PyTorch weight is (out, in); store transposed (in, out) so the
            # kernel computes x @ W (== PyTorch x @ W_pt.T).
            w = jax.random.uniform(
                wk, (unit, hid), dtype=jnp.float32, minval=-bound, maxval=bound
            )
            weights.append(w.astype(param_dtype))
            biases.append(jnp.zeros((hid,), dtype=jnp.float32))
            relu_flags.append(True)
            unit = hid

        bound = 0.003
        key, wk = jax.random.split(key)
        w = jax.random.uniform(
            wk, (hid, out), dtype=jnp.float32, minval=-bound, maxval=bound
        )
        weights.append(w.astype(param_dtype))
        biases.append(jnp.zeros((out,), dtype=jnp.float32))
        relu_flags.append(False)

        # Logical (unpadded) parameters, kept for reference/inspection.
        self.weights = weights
        self.biases = biases
        self.relu_flags = tuple(relu_flags)
        self.out_dim = out

        # Lane-dense padded parameters used by the kernel.  Zero padding keeps
        # the real entries numerically exact: padded output lanes get zero
        # weights + zero bias, and ReLU(0) = 0 feeds zeros into padded input
        # rows of the next layer.
        pweights, pbiases = [], []
        for w, b in zip(weights, biases):
            rp = _round_up(w.shape[0], _LANE)
            cp = _round_up(w.shape[1], _LANE)
            pweights.append(_pad2d(w, rp, cp).astype(param_dtype))
            pbiases.append(
                jnp.pad(b, (0, cp - b.shape[0])).reshape(1, cp).astype(jnp.float32)
            )
        self._pweights = pweights
        self._pbiases = pbiases

        self._forward = jax.jit(
            functools.partial(
                fused_mlp, relu_flags=self.relu_flags, out_dim=self.out_dim
            )
        )

    def __call__(self, x):
        return self._forward(x, self._pweights, self._pbiases)


if __name__ == "__main__":
    key = jax.random.PRNGKey(0)
    key, xk, pk1, pk2 = jax.random.split(key, 4)

    batch, inp, hid, out, num_layer = 2, 16, 32, 8, 2
    x = jax.random.normal(xk, (batch, inp), dtype=jnp.float32)

    # --- f32 model: exact match with the PyTorch-style reference ---
    model = MLP(inp, hid, out, num_layer, pk1)
    y = jax.block_until_ready(model(x))

    ref = x
    for w, b, relu in zip(model.weights, model.biases, model.relu_flags):
        ref = ref @ w.astype(jnp.float32) + b
        if relu:
            ref = jnp.maximum(ref, 0.0)

    assert y.shape == (batch, out)
    assert jnp.allclose(y, ref, atol=1e-5, rtol=1e-5)

    # --- bf16-param model: MXU bf16 path, f32 accumulate / bias / ReLU ---
    model_bf16 = MLP(inp, hid, out, num_layer, pk2, param_dtype=jnp.bfloat16)
    y16 = jax.block_until_ready(model_bf16(x))

    ref16 = x
    for w, b, relu in zip(model_bf16.weights, model_bf16.biases,
                          model_bf16.relu_flags):
        ref16 = ref16.astype(jnp.bfloat16).astype(jnp.float32) @ w.astype(jnp.float32) + b
        if relu:
            ref16 = jnp.maximum(ref16, 0.0)

    assert y16.shape == (batch, out)
    assert jnp.allclose(y16, ref16, atol=2e-2, rtol=2e-2)

    print("KERNEL_OK")
</pallas_src>

<mosaic_0001>
module attributes {stable_mosaic.version = 11 : i64} {
  func.func @_fused_mlp_kernel(%arg0: i32, %arg1: memref<16x128xf32, #tpu.memory_space<vmem>>, %arg2: memref<128x128xf32, #tpu.memory_space<vmem>>, %arg3: memref<1x128xf32, #tpu.memory_space<vmem>>, %arg4: memref<128x128xf32, #tpu.memory_space<vmem>>, %arg5: memref<1x128xf32, #tpu.memory_space<vmem>>, %arg6: memref<128x128xf32, #tpu.memory_space<vmem>>, %arg7: memref<1x128xf32, #tpu.memory_space<vmem>>, %arg8: memref<16x128xf32, #tpu.memory_space<vmem>>) attributes {dimension_semantics = [#tpu.dimension_semantics<parallel>], iteration_bounds = array<i64: 1>, scalar_prefetch = 0 : i64, scratch_operands = 0 : i64, tpu.core_type = #tpu.core_type<tc>, window_params = [{transform_indices = @transform_0, window_bounds = array<i64: 16, 128>}, {pipeline_mode = #tpu.pipeline_mode<synchronous>, transform_indices = @transform_1, window_bounds = array<i64: 128, 128>}, {pipeline_mode = #tpu.pipeline_mode<synchronous>, transform_indices = @transform_2, window_bounds = array<i64: 1, 128>}, {pipeline_mode = #tpu.pipeline_mode<synchronous>, transform_indices = @transform_3, window_bounds = array<i64: 128, 128>}, {pipeline_mode = #tpu.pipeline_mode<synchronous>, transform_indices = @transform_4, window_bounds = array<i64: 1, 128>}, {pipeline_mode = #tpu.pipeline_mode<synchronous>, transform_indices = @transform_5, window_bounds = array<i64: 128, 128>}, {pipeline_mode = #tpu.pipeline_mode<synchronous>, transform_indices = @transform_6, window_bounds = array<i64: 1, 128>}, {transform_indices = @transform_7, window_bounds = array<i64: 16, 128>}]} {
    %c0 = arith.constant 0 : index
    %c0_0 = arith.constant 0 : index
    %0 = vector.load %arg1[%c0, %c0_0] : memref<16x128xf32, #tpu.memory_space<vmem>>, vector<16x128xf32>
    %c0_1 = arith.constant 0 : index
    %c0_2 = arith.constant 0 : index
    %1 = vector.load %arg2[%c0_1, %c0_2] : memref<128x128xf32, #tpu.memory_space<vmem>>, vector<128x128xf32>
    %c0_3 = arith.constant 0 : index
    %c0_4 = arith.constant 0 : index
    %2 = vector.load %arg3[%c0_3, %c0_4] : memref<1x128xf32, #tpu.memory_space<vmem>>, vector<1x128xf32>
    %cst = arith.constant dense<0.000000e+00> : vector<16x128xf32>
    %3 = tpu.matmul %0, %1, %cst {dimension_numbers = #tpu.dot_dimension_numbers<[1], [0], [0], [1], [0, 0, 1, 1], [], []>} : vector<16x128xf32>, vector<128x128xf32>, vector<16x128xf32> -> vector<16x128xf32>
    %4 = vector.broadcast %2 : vector<1x128xf32> to vector<16x128xf32>
    %5 = arith.addf %3, %4 : vector<16x128xf32>
    %cst_5 = arith.constant 0.000000e+00 : f32
    %6 = vector.broadcast %cst_5 : f32 to vector<16x128xf32>
    %7 = arith.maximumf %5, %6 : vector<16x128xf32>
    %c0_6 = arith.constant 0 : index
    %c0_7 = arith.constant 0 : index
    %8 = vector.load %arg4[%c0_6, %c0_7] : memref<128x128xf32, #tpu.memory_space<vmem>>, vector<128x128xf32>
    %c0_8 = arith.constant 0 : index
    %c0_9 = arith.constant 0 : index
    %9 = vector.load %arg5[%c0_8, %c0_9] : memref<1x128xf32, #tpu.memory_space<vmem>>, vector<1x128xf32>
    %cst_10 = arith.constant dense<0.000000e+00> : vector<16x128xf32>
    %10 = tpu.matmul %7, %8, %cst_10 {dimension_numbers = #tpu.dot_dimension_numbers<[1], [0], [0], [1], [0, 0, 1, 1], [], []>} : vector<16x128xf32>, vector<128x128xf32>, vector<16x128xf32> -> vector<16x128xf32>
    %11 = vector.broadcast %9 : vector<1x128xf32> to vector<16x128xf32>
    %12 = arith.addf %10, %11 : vector<16x128xf32>
    %cst_11 = arith.constant 0.000000e+00 : f32
    %13 = vector.broadcast %cst_11 : f32 to vector<16x128xf32>
    %14 = arith.maximumf %12, %13 : vector<16x128xf32>
    %c0_12 = arith.constant 0 : index
    %c0_13 = arith.constant 0 : index
    %15 = vector.load %arg6[%c0_12, %c0_13] : memref<128x128xf32, #tpu.memory_space<vmem>>, vector<128x128xf32>
    %c0_14 = arith.constant 0 : index
    %c0_15 = arith.constant 0 : index
    %16 = vector.load %arg7[%c0_14, %c0_15] : memref<1x128xf32, #tpu.memory_space<vmem>>, vector<1x128xf32>
    %cst_16 = arith.constant dense<0.000000e+00> : vector<16x128xf32>
    %17 = tpu.matmul %14, %15, %cst_16 {dimension_numbers = #tpu.dot_dimension_numbers<[1], [0], [0], [1], [0, 0, 1, 1], [], []>} : vector<16x128xf32>, vector<128x128xf32>, vector<16x128xf32> -> vector<16x128xf32>
    %18 = vector.broadcast %16 : vector<1x128xf32> to vector<16x128xf32>
    %19 = arith.addf %17, %18 : vector<16x128xf32>
    %c0_17 = arith.constant 0 : index
    %c0_18 = arith.constant 0 : index
    %20 = vector.load %arg8[%c0_17, %c0_18] : memref<16x128xf32, #tpu.memory_space<vmem>>, vector<16x128xf32>
    tpu.vector_store %arg8[%c0_17, %c0_18], %19 {strides = array<i32>} : memref<16x128xf32, #tpu.memory_space<vmem>>, vector<16x128xf32>,
    return
  }
  func.func @transform_0(%arg0: i32) -> (i32, i32) {
    %c0_i32 = arith.constant 0 : i32
    %c0_i32_0 = arith.constant 0 : i32
    return %arg0, %c0_i32 : i32, i32
  }
  func.func @transform_1(%arg0: i32) -> (i32, i32) {
    %c0_i32 = arith.constant 0 : i32
    %c0_i32_0 = arith.constant 0 : i32
    %c0_i32_1 = arith.constant 0 : i32
    return %c0_i32, %c0_i32_0 : i32, i32
  }
  func.func @transform_2(%arg0: i32) -> (i32, i32) {
    %c0_i32 = arith.constant 0 : i32
    %c0_i32_0 = arith.constant 0 : i32
    %c0_i32_1 = arith.constant 0 : i32
    return %c0_i32, %c0_i32_0 : i32, i32
  }
  func.func @transform_3(%arg0: i32) -> (i32, i32) {
    %c0_i32 = arith.constant 0 : i32
    %c0_i32_0 = arith.constant 0 : i32
    %c0_i32_1 = arith.constant 0 : i32
    return %c0_i32, %c0_i32_0 : i32, i32
  }
  func.func @transform_4(%arg0: i32) -> (i32, i32) {
    %c0_i32 = arith.constant 0 : i32
    %c0_i32_0 = arith.constant 0 : i32
    %c0_i32_1 = arith.constant 0 : i32
    return %c0_i32, %c0_i32_0 : i32, i32
  }
  func.func @transform_5(%arg0: i32) -> (i32, i32) {
    %c0_i32 = arith.constant 0 : i32
    %c0_i32_0 = arith.constant 0 : i32
    %c0_i32_1 = arith.constant 0 : i32
    return %c0_i32, %c0_i32_0 : i32, i32
  }
  func.func @transform_6(%arg0: i32) -> (i32, i32) {
    %c0_i32 = arith.constant 0 : i32
    %c0_i32_0 = arith.constant 0 : i32
    %c0_i32_1 = arith.constant 0 : i32
    return %c0_i32, %c0_i32_0 : i32, i32
  }
  func.func @transform_7(%arg0: i32) -> (i32, i32) {
    %c0_i32 = arith.constant 0 : i32
    %c0_i32_0 = arith.constant 0 : i32
    return %arg0, %c0_i32 : i32, i32
  }
}

</mosaic_0001>

<bundles_post_ra>
// kernel: fused_mlp.1
= control target key start
LH: loop header
LB: loop body
LE: loop exit
PB: predicated region body
PF: predicated region fallthrough
CT: control target
= control target key end

     0   :  { %12 = vsyncpa [#allocation3], 0  ;;  %s391_s0 = inlined_call_operand.vmem [shape: f32[16,128], index: 0, kind: input, shape index: {}]   ;;  %s392_s1 = inlined_call_operand.hbm [shape: f32[128,128], index: 1, kind: input, shape index: {}]   ;;  %s393_s2 = inlined_call_operand.vmem [shape: f32[1,128], index: 2, kind: input, shape index: {}]   ;;  %s394_s3 = inlined_call_operand.hbm [shape: f32[128,128], index: 3, kind: input, shape index: {}]   ;;  %s395_s4 = inlined_call_operand.vmem [shape: f32[1,128], index: 4, kind: input, shape index: {}]   ;;  %s396_s5 = inlined_call_operand.hbm [shape: f32[128,128], index: 5, kind: input, shape index: {}]   ;;  %s397_s6 = inlined_call_operand.vmem [shape: f32[1,128], index: 6, kind: input, shape index: {}]   ;;  %s398_s7 = inlined_call_operand.vmem [shape: f32[16,128], index: 7, kind: output, shape index: {}]  }
   0x1   :  { %13 = vsyncpa [#allocation5], 0  ;;  %s35_s26 = sshll.u32 %s394_s3, 4  ;;  %s316_s27 = smov [#allocation4]   ;;  %s36_s26 = int_to_ptr.hbm [resolvable:$true] %s35_s26 }
   0x2   :  { %s37_s28 = sshll.u32 %s316_s27, 4  ;;  %s20_s8 = sshll.u32 %s392_s1, 4  ;;  %s38_s28 = int_to_ptr.vmem [resolvable:$true] %s37_s28  ;;  %s21_s8 = int_to_ptr.hbm [resolvable:$true] %s20_s8 }
   0x3   :  { %s317_s9 = smov 128   ;;  %s318_s10 = smov 8  }
   0x4   :  { %43 = dma.hbm_to_vmem [thread:$0]  %s36_s26, 2048, %s38_s28, [#allocation5], %s317_s9, %s317_s9, %s318_s10  }
   0x5   :  { %s319_s11 = smov [#allocation2]   ;;  %s50_s15 = sshll.u32 %s396_s5, 4  ;;  %s51_s15 = int_to_ptr.hbm [resolvable:$true] %s50_s15 }
   0x6   :  { %s22_s12 = sshll.u32 %s319_s11, 4  ;;  %s320_s3 = smov [#allocation6]   ;;  %s23_s12 = int_to_ptr.vmem [resolvable:$true] %s22_s12 }
   0x7   :  { %28 = dma.hbm_to_vmem [thread:$0]  %s21_s8, 2048, %s23_s12, [#allocation3], %s317_s9, %s317_s9, %s318_s10  }
   0x8   :  { %s52_s16 = sshll.u32 %s320_s3, 4  ;;  %s53_s16 = int_to_ptr.vmem [resolvable:$true] %s52_s16 }
   0x9   :  { %58 = dma.hbm_to_vmem [thread:$0]  %s51_s15, 2048, %s53_s16, [#allocation5], %s317_s9, %s317_s9, %s318_s10  }
   0xa   :  { %312 = dma.done.wait [#allocation3], 2048  }
   0xb   :  { %313 = vsyncadd [#allocation3], 4294965248 }
   0xc   :  { %314 = dma.done.wait [#allocation5], 4096  }
   0xd   :  { %315 = vsyncadd [#allocation5], 4294963200  ;;  %v90_v0 = vld [vmem:[#allocation2 + $0x78] sm:$0xff]  ;;  %v89_v1 = vld [vmem:[#allocation2 + $0x70] sm:$0xff] }
   0xe   :  { %95 = vmatpush.msra.mxu0 %v90_v0  ;;  %216 = vmatpush.msra.mxu3 %v90_v0  ;;  %v88_v2 = vld [vmem:[#allocation2 + $0x68] sm:$0xff]  ;;  %v87_v3 = vld [vmem:[#allocation2 + $0x60] sm:$0xff]  ;;  %v86_v4 = vld [vmem:[#allocation2 + $0x58] sm:$0xff] }
   0xf   :  { %v135_v5 = vld [vmem:[#allocation4 + $0x78] sm:$0xff]  ;;  %v134_v6 = vld [vmem:[#allocation4 + $0x70] sm:$0xff]  ;;  %v133_v8 = vld [vmem:[#allocation4 + $0x68] sm:$0xff] }
  0x10   :  { %96 = vmatpush.msra.mxu0 %v89_v1  ;;  %217 = vmatpush.msra.mxu3 %v89_v1  ;;  %v85_v7 = vld [vmem:[#allocation2 + $0x50] sm:$0xff]  ;;  %v84_v9 = vld [vmem:[#allocation2 + $0x48] sm:$0xff]  ;;  %v132_v10 = vld [vmem:[#allocation4 + $0x60] sm:$0xff] }
  0x11   :  { %140 = vmatpush.msra.mxu1 %v135_v5  ;;  %v83_v11 = vld [vmem:[#allocation2 + $0x40] sm:$0xff]  ;;  %v131_v12 = vld [vmem:[#allocation4 + $0x58] sm:$0xff]  ;;  %v130_v14 = vld [vmem:[#allocation4 + $0x50] sm:$0xff] }
  0x12   :  { %97 = vmatpush.msra.mxu0 %v88_v2  ;;  %218 = vmatpush.msra.mxu3 %v88_v2  ;;  %v82_v13 = vld [vmem:[#allocation2 + $0x38] sm:$0xff]  ;;  %v81_v15 = vld [vmem:[#allocation2 + $0x30] sm:$0xff]  ;;  %v129_v16 = vld [vmem:[#allocation4 + $0x48] sm:$0xff] }
  0x13   :  { %141 = vmatpush.msra.mxu1 %v134_v6  ;;  %v80_v17 = vld [vmem:[#allocation2 + $0x28] sm:$0xff]  ;;  %v128_v18 = vld [vmem:[#allocation4 + $0x40] sm:$0xff]  ;;  %v127_v20 = vld [vmem:[#allocation4 + $0x38] sm:$0xff] }
  0x14   :  { %98 = vmatpush.msra.mxu0 %v87_v3  ;;  %219 = vmatpush.msra.mxu3 %v87_v3  ;;  %v79_v19 = vld [vmem:[#allocation2 + $0x20] sm:$0xff]  ;;  %v78_v21 = vld [vmem:[#allocation2 + $0x18] sm:$0xff]  ;;  %v126_v22 = vld [vmem:[#allocation4 + $0x30] sm:$0xff] }
  0x15   :  { %142 = vmatpush.msra.mxu1 %v133_v8  ;;  %v77_v23 = vld [vmem:[#allocation2 + $0x10] sm:$0xff]  ;;  %v125_v24 = vld [vmem:[#allocation4 + $0x28] sm:$0xff]  ;;  %v124_v26 = vld [vmem:[#allocation4 + $0x20] sm:$0xff] }
  0x16   :  { %99 = vmatpush.msra.mxu0 %v86_v4  ;;  %220 = vmatpush.msra.mxu3 %v86_v4  ;;  %v76_v25 = vld [vmem:[#allocation2 + $0x8] sm:$0xff]  ;;  %v75_v27 = vld [vmem:[#allocation2] sm:$0xff]  ;;  %v123_v30 = vld [vmem:[#allocation4 + $0x18] sm:$0xff] }
  0x17   :  { %143 = vmatpush.msra.mxu1 %v132_v10  ;;  %v73_v28 = vld [vmem:[%s391_s0] sm:$0xff]  ;;  %v74_v29 = vld [vmem:[%s391_s0 + $0x8] sm:$0xff]  ;;  %v122_v31 = vld [vmem:[#allocation4 + $0x10] sm:$0xff] }
  0x18   :  { %100 = vmatpush.msra.mxu0 %v85_v7  ;;  %221 = vmatpush.msra.mxu3 %v85_v7  ;;  %v121_v32 = vld [vmem:[#allocation4 + $0x8] sm:$0xff]  ;;  %v120_v33 = vld [vmem:[#allocation4] sm:$0xff]  ;;  %v180_v34 = vld [vmem:[#allocation6 + $0x78] sm:$0xff] }
  0x19   :  { %144 = vmatpush.msra.mxu1 %v131_v12  ;;  %v179_v35 = vld [vmem:[#allocation6 + $0x70] sm:$0xff]  ;;  %185 = vmatpush.msra.mxu2 %v180_v34  ;;  %v178_v36 = vld [vmem:[#allocation6 + $0x68] sm:$0xff]  ;;  %v177_v37 = vld [vmem:[#allocation6 + $0x60] sm:$0xff] }
  0x1a   :  { %101 = vmatpush.msra.mxu0 %v84_v9  ;;  %222 = vmatpush.msra.mxu3 %v84_v9  ;;  %v176_v38 = vld [vmem:[#allocation6 + $0x58] sm:$0xff]  ;;  %v175_v39 = vld [vmem:[#allocation6 + $0x50] sm:$0xff]  ;;  %v174_v40 = vld [vmem:[#allocation6 + $0x48] sm:$0xff] }
  0x1b   :  { %145 = vmatpush.msra.mxu1 %v130_v14  ;;  %186 = vmatpush.msra.mxu2 %v179_v35  ;;  %v173_v41 = vld [vmem:[#allocation6 + $0x40] sm:$0xff]  ;;  %v172_v42 = vld [vmem:[#allocation6 + $0x38] sm:$0xff]  ;;  %v171_v44 = vld [vmem:[#allocation6 + $0x30] sm:$0xff] }
  0x1c   :  { %102 = vmatpush.msra.mxu0 %v83_v11  ;;  %223 = vmatpush.msra.mxu3 %v83_v11  ;;  %v237_v43 = vld [vmem:[%s393_s2] ss:$0 sm:$0xff]  ;;  %v170_v45 = vld [vmem:[#allocation6 + $0x28] sm:$0xff]  ;;  %v168_v50 = vld [vmem:[#allocation6 + $0x18] sm:$0xff] }
  0x1d   :  { %146 = vmatpush.msra.mxu1 %v129_v16  ;;  %187 = vmatpush.msra.mxu2 %v178_v36  ;;  %v169_v48 = vld [vmem:[#allocation6 + $0x20] sm:$0xff]  ;;  %v167_v54 = vld [vmem:[#allocation6 + $0x10] sm:$0xff]  ;;  %v166_v55 = vld [vmem:[#allocation6 + $0x8] sm:$0xff] }
  0x1e   :  { %103 = vmatpush.msra.mxu0 %v82_v13  ;;  %224 = vmatpush.msra.mxu3 %v82_v13  ;;  %v165_v56 = vld [vmem:[#allocation6] sm:$0xff] }
  0x1f   :  { %147 = vmatpush.msra.mxu1 %v128_v18  ;;  %188 = vmatpush.msra.mxu2 %v177_v37  ;;  %v238_v57 = vld [vmem:[%s395_s4] ss:$0 sm:$0xff] }
  0x20   :  { %104 = vmatpush.msra.mxu0 %v81_v15  ;;  %225 = vmatpush.msra.mxu3 %v81_v15  ;;  %v239_v0 = vld [vmem:[%s397_s6] ss:$0 sm:$0xff] }
  0x21   :  { %148 = vmatpush.msra.mxu1 %v127_v20  ;;  %189 = vmatpush.msra.mxu2 %v176_v38 }
  0x22   :  { %105 = vmatpush.msra.mxu0 %v80_v17  ;;  %226 = vmatpush.msra.mxu3 %v80_v17 }
  0x23   :  { %149 = vmatpush.msra.mxu1 %v126_v22  ;;  %190 = vmatpush.msra.mxu2 %v175_v39 }
  0x24   :  { %106 = vmatpush.msra.mxu0 %v79_v19  ;;  %227 = vmatpush.msra.mxu3 %v79_v19 }
  0x25   :  { %150 = vmatpush.msra.mxu1 %v125_v24  ;;  %191 = vmatpush.msra.mxu2 %v174_v40 }
  0x26   :  { %107 = vmatpush.msra.mxu0 %v78_v21  ;;  %228 = vmatpush.msra.mxu3 %v78_v21 }
  0x27   :  { %151 = vmatpush.msra.mxu1 %v124_v26  ;;  %192 = vmatpush.msra.mxu2 %v173_v41 }
  0x28   :  { %108 = vmatpush.msra.mxu0 %v77_v23  ;;  %229 = vmatpush.msra.mxu3 %v77_v23 }
  0x29   :  { %152 = vmatpush.msra.mxu1 %v123_v30  ;;  %193 = vmatpush.msra.mxu2 %v172_v42 }
  0x2a   :  { %109 = vmatpush.msra.mxu0 %v76_v25  ;;  %230 = vmatpush.msra.mxu3 %v76_v25 }
  0x2b   :  { %153 = vmatpush.msra.mxu1 %v122_v31  ;;  %194 = vmatpush.msra.mxu2 %v171_v44 }
  0x2c   :  { %110 = vmatpush.msra.mxu0 %v75_v27  ;;  %231 = vmatpush.msra.mxu3 %v75_v27 }
  0x2d   :  { %111 = vmatmul.f32.vlgmr.msra.gmra.mxu0 %v73_v28  ;;  %114 = vmatmul.f32.vlgmr.msra.gmra.mxu3 %v74_v29 }
  0x2e   :  { %154 = vmatpush.msra.mxu1 %v121_v32  ;;  %195 = vmatpush.msra.mxu2 %v170_v45 }
  0x30   :  { %155 = vmatpush.msra.mxu1 %v120_v33  ;;  %196 = vmatpush.msra.mxu2 %v169_v48 }
  0x32   :  { %197 = vmatpush.msra.mxu2 %v168_v50 }
  0x34   :  { %198 = vmatpush.msra.mxu2 %v167_v54 }
  0x36   :  { %199 = vmatpush.msra.mxu2 %v166_v55 }
  0x38   :  { %200 = vmatpush.msra.mxu2 %v165_v56 }
  0xaa   :  { %v112_v46 = vpop.f32.mrf.mxu0 }
  0xab   :  { %v113_v47 = vadd.f32 %v237_v43, %v112_v46 }
  0xad   :  { %v118_v49 = vmax.f32 %v113_v47, 0.0 }
  0xaf   :  { %156 = vmatmul.f32.vlgmr.msra.gmra.mxu1 %v118_v49 }
  0xb0   :  { %v115_v51 = vpop.f32.mrf.mxu3 }
  0xb1   :  { %v116_v52 = vadd.f32 %v237_v43, %v115_v51 }
  0xb3   :  { %v119_v53 = vmax.f32 %v116_v52, 0.0 }
  0xb7   :  { %159 = vmatmul.f32.gmra.mxu1 %v119_v53 }
 0x12c   :  { %v157_v58 = vpop.f32.mrf.mxu1 }
 0x12d   :  { %v158_v59 = vadd.f32 %v238_v57, %v157_v58 }
 0x12f   :  { %v163_v60 = vmax.f32 %v158_v59, 0.0 }
 0x131   :  { %201 = vmatmul.f32.vlgmr.msra.gmra.mxu2 %v163_v60 }
 0x134   :  { %v160_v61 = vpop.f32.mrf.mxu1 }
 0x135   :  { %v161_v62 = vadd.f32 %v238_v57, %v160_v61 }
 0x137   :  { %v164_v63 = vmax.f32 %v161_v62, 0.0 }
 0x139   :  { %204 = vmatmul.f32.gmra.mxu2 %v164_v63 }
 0x1b4   :  { %v202_v1 = vpop.f32.mrf.mxu2 }
 0x1b5   :  { %v203_v2 = vadd.f32 %v239_v0, %v202_v1 }
 0x1b7   :  { %208 = vst [vmem:[%s398_s7] sm:$0xff] %v203_v2 }
 0x1bc   :  { %v205_v3 = vpop.f32.mrf.mxu2 }
 0x1bd   :  { %v206_v4 = vadd.f32 %v239_v0, %v205_v3 }
 0x1bf   :  { %209 = vst [vmem:[%s398_s7 + $0x8] sm:$0xff] %v206_v4 }
 0x1c0   :  { %214 = vsyncpa [#allocation3], 1 }
 0x1c1   :  { %215 = vsyncpa [#allocation5], 1 }

</bundles_post_ra>
